<compile_context>
chip_gen: v5e
topology: v5e:2x2
jax: 0.10.0
libtpu: 0.0.40
codegen_flags: <defaults>
</compile_context>

<pallas_src>
import functools

import jax
import jax.numpy as jnp
from jax.experimental import pallas as pl
from jax.experimental.pallas import tpu as pltpu


# ----------------------------- kernels ------------------------------------


def _sine_kernel_bias(x_ref, w_ref, b_ref, o_ref, *, omega_0):
    # x_ref: (tile_m, in_features), w_ref: (in_features, out_p), b_ref: (1, out_p)
    z = jnp.dot(x_ref[...], w_ref[...], preferred_element_type=jnp.float32)
    z = z + b_ref[...]
    if omega_0 != 1.0:
        z = omega_0 * z
    o_ref[...] = jnp.sin(z).astype(o_ref.dtype)


def _sine_kernel_nobias(x_ref, w_ref, o_ref, *, omega_0):
    z = jnp.dot(x_ref[...], w_ref[...], preferred_element_type=jnp.float32)
    if omega_0 != 1.0:
        z = omega_0 * z
    o_ref[...] = jnp.sin(z).astype(o_ref.dtype)


# ----------------------------- wrapper -------------------------------------


def _round_up(x, m):
    return ((x + m - 1) // m) * m


def _choose_tile_m(batch, in_f, out_f_padded, itemsize):
    """Pick a batch tile: VMEM-budgeted, sublane/MXU aligned, >=2 grid steps."""
    # Conservative budget so double-buffered x/out tiles + resident weight fit
    # comfortably even on v7x (64 MiB physical / 32 MiB default scoped VMEM).
    vmem_budget = 16 * 1024 * 1024
    weight_bytes = in_f * out_f_padded * itemsize
    per_row = 2 * (in_f + out_f_padded) * itemsize  # double-buffered x + out
    fit = max(8, (vmem_budget - weight_bytes) // max(per_row, 1))
    tile = min(2048, int(fit))
    tile = max(8, (tile // 8) * 8)
    if tile >= 256:
        tile = (tile // 256) * 256  # MXU-friendly M
    # Ensure at least 2 grid steps when the batch allows (v7x dual TC).
    if batch > 8:
        tile = min(tile, _round_up((batch + 1) // 2, 8))
    else:
        tile = min(tile, 8)
    return tile


def sine_layer_forward(x, weight, bias=None, omega_0=30.0, *, tile_m=None):
    """Pallas implementation of SineLayer.forward.

    x:      (batch, in_features) float32
    weight: (out_features, in_features) float32 (PyTorch Linear layout)
    bias:   (out_features,) float32 or None
    """
    batch, in_features = x.shape
    out_features, in_features_w = weight.shape
    assert in_features_w == in_features
    itemsize = jnp.dtype(x.dtype).itemsize

    # Lane-dense output: pad N to a multiple of 128 (pad weight/bias once).
    out_p = _round_up(out_features, 128)

    if tile_m is None:
        tile_m = _choose_tile_m(batch, in_features, out_p, itemsize)
    assert tile_m % 8 == 0

    # Ragged batch: zero-pad rows, slice the result back at the end.
    batch_p = _round_up(batch, tile_m)
    xp = x if batch_p == batch else jnp.pad(x, ((0, batch_p - batch), (0, 0)))

    # Pre-transpose + pad the weight once (tiny one-off XLA op); the padded
    # (in_features, out_p) block stays resident in VMEM across all grid steps.
    w_t = jnp.pad(weight.T, ((0, 0), (0, out_p - out_features)))

    grid = (batch_p // tile_m,)
    in_specs = [
        pl.BlockSpec((tile_m, in_features), lambda i: (i, 0)),   # streamed x
        pl.BlockSpec((in_features, out_p), lambda i: (0, 0)),    # resident W^T
    ]
    operands = [xp, w_t]

    if bias is not None:
        b_p = jnp.pad(bias.reshape(1, out_features),
                      ((0, 0), (0, out_p - out_features)))
        in_specs.append(pl.BlockSpec((1, out_p), lambda i: (0, 0)))
        operands.append(b_p)
        kernel = functools.partial(_sine_kernel_bias, omega_0=float(omega_0))
    else:
        kernel = functools.partial(_sine_kernel_nobias, omega_0=float(omega_0))

    out_padded = pl.pallas_call(
        kernel,
        out_shape=jax.ShapeDtypeStruct((batch_p, out_p), x.dtype),
        grid_spec=pltpu.PrefetchScalarGridSpec(
            num_scalar_prefetch=0,
            grid=grid,
            in_specs=in_specs,
            out_specs=pl.BlockSpec((tile_m, out_p), lambda i: (i, 0)),
        ),
        compiler_params=pltpu.CompilerParams(
            dimension_semantics=("parallel",),
        ),
    )(*operands)

    return out_padded[:batch, :out_features]


# ----------------------------- init helpers --------------------------------


def init_sine_layer_params(key, in_features, out_features, *, bias=True,
                           is_first=False, omega_0=30.0):
    """SIREN init matching SineLayer.init_weights (bias keeps PyTorch's
    default Linear bound 1/sqrt(in_features))."""
    kw, kb = jax.random.split(key)
    if is_first:
        lim = 1.0 / in_features
    else:
        lim = float(jnp.sqrt(6.0 / in_features)) / omega_0
    weight = jax.random.uniform(
        kw, (out_features, in_features), jnp.float32, minval=-lim, maxval=lim
    )
    if bias:
        blim = 1.0 / float(jnp.sqrt(in_features))
        b = jax.random.uniform(
            kb, (out_features,), jnp.float32, minval=-blim, maxval=blim
        )
    else:
        b = None
    return weight, b


def fold_omega_into_params(weight, bias, omega_0):
    """Fold omega_0 into the params once at init time so the kernel computes
    sin(x @ W'^T + b') with no per-element scale (call forward with omega_0=1)."""
    w_f = omega_0 * weight
    b_f = None if bias is None else omega_0 * bias
    return w_f, b_f


# ----------------------------- demo / check --------------------------------


if __name__ == "__main__":
    key = jax.random.PRNGKey(0)
    kx, kp = jax.random.split(key)

    # SIREN first layer at small shapes: (x, y) coordinates -> 32 hidden.
    batch, in_features, out_features = 64, 2, 32
    omega_0 = 30.0

    x = jax.random.uniform(kx, (batch, in_features), jnp.float32,
                           minval=-1.0, maxval=1.0)
    weight, bias = init_sine_layer_params(
        kp, in_features, out_features, bias=True, is_first=True, omega_0=omega_0,
    )

    # Path 1: omega applied inside the kernel.
    out = sine_layer_forward(x, weight, bias, omega_0=omega_0)
    out = jax.block_until_ready(out)

    ref = jnp.sin(omega_0 * (x @ weight.T + bias))
    assert out.shape == (batch, out_features)
    assert jnp.allclose(out, ref, atol=1e-4, rtol=1e-4)

    # Path 2: omega folded into params at init time (no in-kernel scale).
    w_f, b_f = fold_omega_into_params(weight, bias, omega_0)
    out_folded = jax.block_until_ready(
        sine_layer_forward(x, w_f, b_f, omega_0=1.0))
    assert jnp.allclose(out_folded, ref, atol=1e-4, rtol=1e-4)

    # Path 3: no-bias variant (bias operand dropped entirely).
    out_nb = jax.block_until_ready(
        sine_layer_forward(x, weight, None, omega_0=omega_0))
    ref_nb = jnp.sin(omega_0 * (x @ weight.T))
    assert jnp.allclose(out_nb, ref_nb, atol=1e-4, rtol=1e-4)

    print("KERNEL_OK")
</pallas_src>

<mosaic_0001>
module attributes {stable_mosaic.version = 11 : i64} {
  func.func @_sine_kernel_bias(%arg0: i32, %arg1: memref<32x2xf32, #tpu.memory_space<vmem>>, %arg2: memref<2x128xf32, #tpu.memory_space<vmem>>, %arg3: memref<1x128xf32, #tpu.memory_space<vmem>>, %arg4: memref<32x128xf32, #tpu.memory_space<vmem>>) attributes {dimension_semantics = [#tpu.dimension_semantics<parallel>], iteration_bounds = array<i64: 2>, scalar_prefetch = 0 : i64, scratch_operands = 0 : i64, tpu.core_type = #tpu.core_type<tc>, window_params = [{transform_indices = @transform_0, window_bounds = array<i64: 32, 2>}, {pipeline_mode = #tpu.pipeline_mode<synchronous>, transform_indices = @transform_1, window_bounds = array<i64: 2, 128>}, {pipeline_mode = #tpu.pipeline_mode<synchronous>, transform_indices = @transform_2, window_bounds = array<i64: 1, 128>}, {transform_indices = @transform_3, window_bounds = array<i64: 32, 128>}]} {
    %c0 = arith.constant 0 : index
    %c0_0 = arith.constant 0 : index
    %0 = vector.load %arg1[%c0, %c0_0] : memref<32x2xf32, #tpu.memory_space<vmem>>, vector<32x2xf32>
    %c0_1 = arith.constant 0 : index
    %c0_2 = arith.constant 0 : index
    %1 = vector.load %arg2[%c0_1, %c0_2] : memref<2x128xf32, #tpu.memory_space<vmem>>, vector<2x128xf32>
    %cst = arith.constant dense<0.000000e+00> : vector<32x128xf32>
    %2 = tpu.matmul %0, %1, %cst {dimension_numbers = #tpu.dot_dimension_numbers<[1], [0], [0], [1], [0, 0, 1, 1], [], []>} : vector<32x2xf32>, vector<2x128xf32>, vector<32x128xf32> -> vector<32x128xf32>
    %c0_3 = arith.constant 0 : index
    %c0_4 = arith.constant 0 : index
    %3 = vector.load %arg3[%c0_3, %c0_4] : memref<1x128xf32, #tpu.memory_space<vmem>>, vector<1x128xf32>
    %4 = vector.broadcast %3 : vector<1x128xf32> to vector<32x128xf32>
    %5 = arith.addf %2, %4 : vector<32x128xf32>
    %cst_5 = arith.constant 3.000000e+01 : f32
    %6 = vector.broadcast %cst_5 : f32 to vector<32x128xf32>
    %7 = arith.mulf %6, %5 : vector<32x128xf32>
    %8 = math.sin %7 : vector<32x128xf32>
    %c0_6 = arith.constant 0 : index
    %c0_7 = arith.constant 0 : index
    %9 = vector.load %arg4[%c0_6, %c0_7] : memref<32x128xf32, #tpu.memory_space<vmem>>, vector<32x128xf32>
    tpu.vector_store %arg4[%c0_6, %c0_7], %8 {strides = array<i32>} : memref<32x128xf32, #tpu.memory_space<vmem>>, vector<32x128xf32>,
    return
  }
  func.func @transform_0(%arg0: i32) -> (i32, i32) {
    %c0_i32 = arith.constant 0 : i32
    %c0_i32_0 = arith.constant 0 : i32
    return %arg0, %c0_i32 : i32, i32
  }
  func.func @transform_1(%arg0: i32) -> (i32, i32) {
    %c0_i32 = arith.constant 0 : i32
    %c0_i32_0 = arith.constant 0 : i32
    %c0_i32_1 = arith.constant 0 : i32
    return %c0_i32, %c0_i32_0 : i32, i32
  }
  func.func @transform_2(%arg0: i32) -> (i32, i32) {
    %c0_i32 = arith.constant 0 : i32
    %c0_i32_0 = arith.constant 0 : i32
    %c0_i32_1 = arith.constant 0 : i32
    return %c0_i32, %c0_i32_0 : i32, i32
  }
  func.func @transform_3(%arg0: i32) -> (i32, i32) {
    %c0_i32 = arith.constant 0 : i32
    %c0_i32_0 = arith.constant 0 : i32
    return %arg0, %c0_i32 : i32, i32
  }
}

</mosaic_0001>

<bundles_post_ra>
// kernel: tpu_custom_call.1
= control target key start
LH: loop header
LB: loop body
LE: loop exit
PB: predicated region body
PF: predicated region fallthrough
CT: control target
= control target key end

     0   :  { %8 = vsyncpa [#allocation3], 0  ;;  %s1632_s0 = inlined_call_operand.vmem [shape: f32[64,2], index: 0, kind: input, shape index: {}]   ;;  %s1633_s1 = inlined_call_operand.vmem [shape: f32[2,128], index: 1, kind: input, shape index: {}]   ;;  %s1634_s2 = inlined_call_operand.vmem [shape: f32[1,128], index: 2, kind: input, shape index: {}]   ;;  %s1635_s3 = inlined_call_operand.hbm [shape: f32[64,128], index: 3, kind: output, shape index: {}]  }
   0x1   :  { %10 = vsyncpa [#allocation3 + $0x1], 0  ;;  %s1108_s12 = smov 0   ;;  %s1110_s13 = smov 0  }
   0x2   :  { %s1112_s14 = smov 0   ;;  %s1114_s15 = smov 0  }
   0x3 LB: > { %s1129_s16 = sadd.s32 4294967295, %s1077_s15   ;;  %s933_s17 = sadd.s32 4294967294, %s1077_s15   ;;  %s1077_s15 = sphi %s1114_s15, %s1647_s15   ;;  %s1073_s14 = sphi %s1112_s14, %s1646_s14   ;;  %s1069_s13 = sphi %s1110_s13, %s1645_s13   ;;  %s1065_s12 = sphi %s1108_s12, %s1644_s12  }
   0x4   : > { %s1133_s18 = sadd.s32 1, %s1077_s15   ;;  %s91_s19 = sadd.s32 1, %s1073_s14 }
   0x5   : > { %s88_s20 = ssub.s32 %s1077_s15, %s1133_s18  ;;  %p101_p0 = scmp.ne.s32.totalorder %s1073_s14, %s1069_s13 }
   0x6   : > { %p89_p1 = scmp.eq.s32.totalorder %s88_s20, 0  ;;  %p102_p2 = scmp.eq.s32.totalorder %s1129_s16, 1 }
   0x7   : > { %p107_p3 = scmp.ne.s32.totalorder %s1069_s13, %s1065_s12  ;;  %p108_p4 = scmp.eq.s32.totalorder %s933_s17, 1 }
   0x8   : > { %s1144_s21 = scalar_select %p89_p1, %s1073_s14, %s91_s19  }
   0x9   : > { %p1146_p5 = por %p102_p2, %p101_p0  ;;  %p1150_p6 = por %p108_p4, %p107_p3 }
   0xa   : > { %p936_p7 = scmp.ge.s32.totalorder %s1077_s15, 1  ;;  %p141_p8 = scmp.lt.s32.totalorder %s1077_s15, 3 }
   0xc   : > { %p142_p9 = pnand %p936_p7, %p141_p8 }
   0xd   : > { %s938_s26 = sshll.u32 (!%p142_p9), %s1129_s16, 2  ;;  %s162_s6 = sand.u32 (!%p142_p9), 1, %s1069_s13  }
   0xe   : > { %145 = sbr.rel (%p142_p9) target bundleno = 350 (0x15e), region = 32  ;;  %p166_p10 = scmp.lt.s32.totalorder (!%p142_p9), %s938_s26, 7 }
   0xf   : > { %s937_s7 = sshll.u32 (!%p142_p9), %s162_s6, 5  ;;  %s962_s9 = sshll.u32 (!%p142_p9), %s1129_s16, 5 }
  0x10   : > { %s1492_s8 = scalar_lea.vmem (!%p142_p9), [#allocation2], %s937_s7  ;;  %s867_s17 = scalar_lea.hbm (!%p142_p9), %s1635_s3, %s962_s9 }
  0x11   : > { %s868_s19 = sshll.u32 (!%p142_p9), %s1492_s8, 4  ;;  %s870_s20 = sshll.u32 (!%p142_p9), %s867_s17, 4  ;;  %s869_s19 = int_to_ptr.vmem [resolvable:$true] %s868_s19  ;;  %s871_s20 = int_to_ptr.hbm [resolvable:$true] %s870_s20 }
  0x12   : > { %s856_s16 = scalar_lea.sflag (!%p142_p9), [#allocation3], %s162_s6  ;;  %s1029_s24 = sshra.s32 (!%p142_p9), %s871_s20, 4  ;;  %s1030_s24 = int_to_ptr.hbm [resolvable:$true] %s1029_s24 }
  0x13   : > { %v176_v0 = vld [vmem:[%s1633_s1] sm:$0x3]  ;;  %vm194_vm0 = vcmask 1041408   ;;  %s1649_s26 = smov (!%p166_p10, %s938_s26), 7  ;;  %vm181_vm1 = vcmask 15360   ;;  %s1031_s25 = scalar_lea.hbm %s1030_s24, 32 }
  0x14   : > { %940 = vmatpush.msk.msra.mxu0 %vm194_vm0, %v176_v0  ;;  %963 = vmatpush.msk.msra.mxu1 %vm194_vm0, %v176_v0  ;;  %s939_s27 = sshll.u32 %s1649_s26, 3  ;;  %v1166_v5 = vld [vmem:[%s1634_s2] ss:$0 sm:$0xff]  ;;  %v1079_v36 = vmov 683565275   ;;  %p1032_p11 = scmp.ne.s32.totalorder %s1030_s24, %s1031_s25 }
  0x15   : > { %964 = vmatpush.msk.msra.mxu2 %vm194_vm0, %v176_v0  ;;  %965 = vmatpush.msk.msra.mxu3 %vm194_vm0, %v176_v0  ;;  %s169_s30 = scalar_lea.vmem %s1632_s0, %s939_s27  ;;  %v1080_v38 = vmov 2475754826   ;;  %v1081_v40 = vmov 2131351028   ;;  %v1082_v42 = vmov 2102212464   ;;  %p1036_p0 = scmp.lt.s32.totalorder %s1030_s24, %s1635_s3 }
  0x16   : > { %v172_v1 = vld [vmem:[%s169_s30] sm:$0xff]  ;;  %v173_v2 = vld [vmem:[%s169_s30 + $0x8] sm:$0xff]  ;;  %v174_v3 = vld [vmem:[%s169_s30 + $0x10] sm:$0xff]  ;;  %v1083_v44 = vmov 920167782   ;;  %p1033_p12 = pnand %p1032_p11, %p1146_p5  ;;  %s1035_s28 = scalar_lea.hbm %s1635_s3, 64 }
  0x17   : > { %941 = vmatmul.msk.f32.vlgmr.msra.gmra.mxu0 %vm181_vm1, %v172_v1  ;;  %942 = vmatmul.msk.f32.vlgmr.msra.gmra.mxu1 %vm181_vm1, %v173_v2  ;;  %v175_v4 = vld [vmem:[%s169_s30 + $0x18] sm:$0xff]  ;;  %v1084_v53 = vmov 1326507024   ;;  %p1037_p1 = scmp.lt.s32.totalorder %s1035_s28, %s1031_s25 }
  0x18   : > { %943 = vmatmul.msk.f32.vlgmr.msra.gmra.mxu2 %vm181_vm1, %v174_v3  ;;  %944 = vmatmul.msk.f32.vlgmr.msra.gmra.mxu3 %vm181_vm1, %v175_v4  ;;  %p1034_p13 = pneg %p1033_p12 }
  0x19   : > { %p1038_p2 = por %p1037_p1, %p1036_p0 }
  0x1b   : > { %p1039_p3 = pnand %p1038_p2, %p1034_p13 }
  0x94   : > { %v215_v6 = vpop.f32.mrf.mxu0  ;;  %v218_v7 = vpop.f32.mrf.mxu1 }
  0x95   : > { %v216_v8 = vadd.f32 %v1166_v5, %v215_v6  ;;  %v219_v9 = vadd.f32 %v1166_v5, %v218_v7 }
  0x97   : > { %v1170_v10 = vmul.f32 30.0, %v216_v8  ;;  %v1172_v11 = vmul.f32 30.0, %v219_v9 }
  0x99   : > { %v231_v12 = vand.u32 2147483647, %v1170_v10  ;;  %v234_v13 = vand.u32 2139095040, %v1170_v10  ;;  %v386_v14 = vand.u32 2147483647, %v1172_v11  ;;  %v389_v15 = vand.u32 2139095040, %v1172_v11 }
  0x9b   : > { %v235_v16 = vshrl.u32 %v234_v13, 23  ;;  %v238_v17 = vand.u32 8388607, %v231_v12  ;;  %v390_v18 = vshrl.u32 %v389_v15, 23  ;;  %v221_v20 = vpop.f32.mrf.mxu2  ;;  %v393_v23 = vand.u32 8388607, %v386_v14 }
  0x9c   : > { %v222_v26 = vadd.f32 %v1166_v5, %v221_v20 }
  0x9d   : > { %v945_v19 = vadd.s32 4294967169, %v235_v16  ;;  %v239_v21 = vor.u32 8388608, %v238_v17  ;;  %v948_v22 = vadd.s32 4294967169, %v390_v18  ;;  %v394_v29 = vor.u32 8388608, %v393_v23 }
  0x9e   : > { %v1189_v34 = vmul.f32 30.0, %v222_v26 }
  0x9f   : > { %v241_v24 = vadd.s32 1, %v945_v19  ;;  %v396_v25 = vadd.s32 1, %v948_v22  ;;  %v1183_v28 = vshll.u32 %v239_v21, 8  ;;  %v1197_v47 = vshll.u32 %v394_v29, 8 }
  0xa0   : > { %v544_v61 = vand.u32 2139095040, %v1189_v34 }
  0xa1   : > { %vm242_vm2 = vcmp.gt.s32.totalorder %v241_v24, 0  ;;  %vm397_vm3 = vcmp.gt.s32.totalorder %v396_v25, 0  ;;  %v280_v46 = vand.u32 65535, %v1183_v28  ;;  %v281_v51 = vshrl.u32 %v1183_v28, 16 }
  0xa2   : > { %v243_v27 = vsel %vm242_vm2, %v241_v24, 0  ;;  %v398_v31 = vsel %vm397_vm3, %v396_v25, 0  ;;  %v1241_v17 = vand.u32 65535, %v1197_v47 }
  0xa3   : > { %v245_v30 = vand.u32 31, %v243_v27  ;;  %v1185_v32 = vshrl.u32 %v243_v27, 5  ;;  %v1187_v33 = vand.u32 31, %v398_v31  ;;  %v1247_v24 = vshrl.u32 %v398_v31, 5 }
  0xa5   : > { %v246_v35 = vsub.s32 32, %v245_v30  ;;  %v248_v37 = vshll.u32 %v1079_v36, %v245_v30  ;;  %v251_v39 = vshll.u32 %v1080_v38, %v245_v30  ;;  %v254_v41 = vshll.u32 %v1081_v40, %v245_v30 }
  0xa6   : > { %v257_v43 = vshll.u32 %v1082_v42, %v245_v30  ;;  %v260_v45 = vshll.u32 %v1083_v44, %v245_v30  ;;  %vm263_vm4 = vcmp.lt.s32.totalorder %v1185_v32, 1  ;;  %vm266_vm5 = vcmp.lt.s32.totalorder %v1185_v32, 4 }
  0xa7   : > { %v249_v48 = vshrl.u32 %v1080_v38, %v246_v35  ;;  %v252_v49 = vshrl.u32 %v1081_v40, %v246_v35  ;;  %v255_v50 = vshrl.u32 %v1082_v42, %v246_v35  ;;  %v258_v52 = vshrl.u32 %v1083_v44, %v246_v35 }
  0xa8   : > { %v261_v54 = vshrl.u32 %v1084_v53, %v246_v35  ;;  %v1208_v58 = vsub.s32 32, %v1187_v33  ;;  %vm265_vm6 = vcmp.lt.s32.totalorder %v1185_v32, 3  ;;  %v247_v62 = vshrl.u32 %v1079_v36, %v246_v35 }
  0xa9   : > { %v250_v55 = vor.u32 %v249_v48, %v248_v37  ;;  %v253_v56 = vor.u32 %v252_v49, %v251_v39  ;;  %v256_v57 = vor.u32 %v255_v50, %v254_v41  ;;  %v259_v59 = vor.u32 %v258_v52, %v257_v43 }
  0xaa   : > { %v262_v60 = vor.u32 %v261_v54, %v260_v45  ;;  %vm264_vm7 = vcmp.lt.s32.totalorder %v1185_v32, 2  ;;  %v403_v3 = vshll.u32 %v1079_v36, %v1187_v33  ;;  %v406_v4 = vshll.u32 %v1080_v38, %v1187_v33 }
  0xab   : > { %v271_v63 = vsel %vm263_vm4, %v250_v55, %v253_v56  ;;  %v275_v0 = vsel %vm263_vm4, %v253_v56, %v256_v57  ;;  %v272_v1 = vsel %vm266_vm5, %v259_v59, 920167782  ;;  %v268_v6 = vsel %vm266_vm5, %v256_v57, 2102212464 }
  0xac   : > { %v276_v2 = vsel %vm266_vm5, %v262_v60, 1326507024  ;;  %v273_v7 = vsel %vm265_vm6, %v256_v57, %v272_v1  ;;  %v404_v9 = vshrl.u32 %v1080_v38, %v1208_v58  ;;  %v407_v16 = vshrl.u32 %v1081_v40, %v1208_v58 }
  0xad   : > { %v277_v8 = vsel %vm265_vm6, %v259_v59, %v276_v2  ;;  %v274_v13 = vsel %vm264_vm7, %v271_v63, %v273_v7  ;;  %v267_v22 = vsel %vm263_vm4, %v247_v62, %v250_v55  ;;  %v269_v23 = vsel %vm265_vm6, %v253_v56, %v268_v6 }
  0xae   : > { %v278_v15 = vsel %vm264_vm7, %v275_v0, %v277_v8  ;;  %v304_v20 = vand.u32 65535, %v274_v13  ;;  %v305_v21 = vshrl.u32 %v274_v13, 16  ;;  %v1249_v25 = vor.u32 %v404_v9, %v403_v3 }
  0xaf   : > { %v282_v18 = vand.u32 65535, %v278_v15  ;;  %v283_v19 = vshrl.u32 %v278_v15, 16  ;;  %v1251_v29 = vor.u32 %v407_v16, %v406_v4  ;;  %v409_v30 = vshll.u32 %v1081_v40, %v1187_v33 }
  0xb0   : > { %v307_v37 = vmul.u32 %v305_v21, %v280_v46  ;;  %v308_v39 = vmul.u32 %v304_v20, %v281_v51  ;;  %v410_v41 = vshrl.u32 %v1082_v42, %v1208_v58  ;;  %v306_v48 = vmul.u32 %v304_v20, %v280_v46 }
  0xb1   : > { %v285_v26 = vmul.u32 %v283_v19, %v280_v46  ;;  %v286_v27 = vmul.u32 %v282_v18, %v281_v51  ;;  %v284_v35 = vmul.u32 %v282_v18, %v280_v46  ;;  %v287_v43 = vmul.u32 %v283_v19, %v281_v51 }
  0xb2   : > { %v309_v31 = vmul.u32 %v305_v21, %v281_v51  ;;  %v310_v54 = vshll.u32 %v307_v37, 16  ;;  %v312_v56 = vshll.u32 %v308_v39, 16  ;;  %v412_v57 = vshll.u32 %v1082_v42, %v1187_v33 }
  0xb3   : > { %v288_v45 = vshll.u32 %v285_v26, 16  ;;  %v289_v49 = vshrl.u32 %v285_v26, 16  ;;  %v290_v50 = vshll.u32 %v286_v27, 16  ;;  %v291_v52 = vshrl.u32 %v286_v27, 16 }
  0xb4   : > { %v1085_v59 = vmov 0   ;;  %vm314_vm9 = vc.u32 %v306_v48, %v310_v54  ;;  %v316_v62 = vadd.s32 %v310_v54, %v306_v48  ;;  %v413_v63 = vshrl.u32 %v1083_v44, %v1208_v58 }
  0xb5   : > { %vm292_vm8 = vc.u32 %v284_v35, %v288_v45  ;;  %v294_v55 = vadd.s32 %v288_v45, %v284_v35  ;;  %v315_v51 = vsel %vm314_vm9, 1, %v1085_v59  ;;  %v415_v0 = vshll.u32 %v1083_v44, %v1187_v33 }
  0xb6   : > { %v293_v60 = vsel %vm292_vm8, 1, %v1085_v59  ;;  %v317_v2 = vadd.s32 %v315_v51, %v309_v31  ;;  %vm318_vm11 = vc.u32 %v316_v62, %v312_v56  ;;  %v411_v3 = vor.u32 %v410_v41, %v409_v30 }
  0xb7   : > { %v295_v46 = vadd.s32 %v293_v60, %v287_v43  ;;  %vm296_vm10 = vc.u32 %v294_v55, %v290_v50  ;;  %v319_v6 = vsel %vm318_vm11, 1, %v1085_v59  ;;  %v414_v7 = vor.u32 %v413_v63, %v412_v57 }
  0xb8   : > { %v297_v1 = vsel %vm296_vm10, 1, %v1085_v59  ;;  %v416_v8 = vshrl.u32 %v1084_v53, %v1208_v58  ;;  %v311_v9 = vshrl.u32 %v307_v37, 16  ;;  %v321_v13 = vadd.s32 %v319_v6, %v317_v2 }
  0xb9   : > { %v299_v4 = vadd.s32 %v297_v1, %v295_v46  ;;  %vm418_vm12 = vcmp.lt.s32.totalorder %v1247_v24, 1  ;;  %vm420_vm13 = vcmp.lt.s32.totalorder %v1247_v24, 3  ;;  %v313_v33 = vshrl.u32 %v308_v39, 16 }
  0xba   : > { %v417_v16 = vor.u32 %v416_v8, %v415_v0  ;;  %vm421_vm14 = vcmp.lt.s32.totalorder %v1247_v24, 4  ;;  %v1272_v18 = vadd.s32 %v316_v62, %v312_v56  ;;  %v322_v19 = vadd.s32 %v321_v13, %v311_v9 }
  0xbb   : > { %v300_v15 = vadd.s32 %v299_v4, %v289_v49  ;;  %v426_v20 = vsel %vm418_vm12, %v1249_v25, %v1251_v29  ;;  %v427_v21 = vsel %vm421_vm14, %v414_v7, 920167782  ;;  %vm419_vm15 = vcmp.lt.s32.totalorder %v1247_v24, 2 }
  0xbc   : > { %v428_v27 = vsel %vm420_vm13, %v411_v3, %v427_v21  ;;  %v430_v30 = vsel %vm418_vm12, %v1251_v29, %v411_v3  ;;  %v270_v35 = vsel %vm264_vm7, %v267_v22, %v269_v23  ;;  %v323_v37 = vadd.s32 %v322_v19, %v313_v33 }
  0xbd   : > { %v1280_v26 = vadd.s32 %v300_v15, %v291_v52  ;;  %v429_v39 = vsel %vm419_vm15, %v426_v20, %v428_v27  ;;  %v431_v41 = vsel %vm421_vm14, %v417_v16, 1326507024  ;;  %v436_v45 = vshrl.u32 %v1197_v47, 16 }
  0xbe   : > { %v432_v43 = vsel %vm420_vm13, %v414_v7, %v431_v41  ;;  %v459_v48 = vand.u32 65535, %v429_v39  ;;  %v327_v31 = vadd.s32 1, %v323_v37  ;;  %v460_v22 = vshrl.u32 %v429_v39, 16 }
  0xbf   : > { %vm326_vm0 = vc.u32 %v1280_v26, %v1272_v18  ;;  %v433_v32 = vsel %vm419_vm15, %v430_v30, %v432_v43  ;;  %v545_v23 = vshrl.u32 %v544_v61, 23  ;;  %v324_v49 = vmul.u32 %v1183_v28, %v270_v35 }
  0xc0   : > { %v437_v50 = vand.u32 65535, %v433_v32  ;;  %v438_v52 = vshrl.u32 %v433_v32, 16  ;;  %v328_v54 = vsel %vm326_vm0, %v327_v31, %v323_v37  ;;  %v402_v55 = vshrl.u32 %v1079_v36, %v1208_v58 }
  0xc1   : > { %v462_v56 = vmul.u32 %v460_v22, %v1241_v17  ;;  %v463_v57 = vmul.u32 %v459_v48, %v436_v45  ;;  %v329_v60 = vadd.s32 %v328_v54, %v324_v49  ;;  %v423_v62 = vsel %vm421_vm14, %v411_v3, 2102212464 }
  0xc2   : > { %v440_v63 = vmul.u32 %v438_v52, %v1241_v17  ;;  %v441_v46 = vmul.u32 %v437_v50, %v436_v45  ;;  %v461_v61 = vmul.u32 %v459_v48, %v1241_v17  ;;  %v464_v51 = vmul.u32 %v460_v22, %v436_v45 }
  0xc3   : > { %v465_v28 = vshll.u32 %v462_v56, 16  ;;  %v951_v0 = vadd.s32 4294967169, %v545_v23  ;;  %v330_v1 = vadd.s32 536870912, %v329_v60  ;;  %v439_v2 = vmul.u32 %v437_v50, %v1241_v17 }
  0xc4   : > { %v442_v4 = vmul.u32 %v438_v52, %v436_v45  ;;  %v443_v58 = vshll.u32 %v440_v63, 16  ;;  %v445_v6 = vshll.u32 %v441_v46, 16  ;;  %v467_v7 = vshll.u32 %v463_v57, 16 }
  0xc5   : > { %vm469_vm1 = vc.u32 %v461_v61, %v465_v28  ;;  %v471_v8 = vadd.s32 %v465_v28, %v461_v61  ;;  %v331_v9 = vshrl.u32 %v330_v1, 30  ;;  %v541_v16 = vand.u32 2147483647, %v1189_v34 }
  0xc6   : > { %vm447_vm2 = vc.u32 %v439_v2, %v443_v58  ;;  %v449_v3 = vadd.s32 %v443_v58, %v439_v2  ;;  %v470_v13 = vsel %vm469_vm1, 1, %v1085_v59  ;;  %v422_v17 = vsel %vm418_vm12, %v402_v55, %v1249_v25 }
  0xc7   : > { %v448_v15 = vsel %vm447_vm2, 1, %v1085_v59  ;;  %v472_v33 = vadd.s32 %v470_v13, %v464_v51  ;;  %vm473_vm3 = vc.u32 %v471_v8, %v467_v7  ;;  %v332_v19 = vshll.u32 %v331_v9, 30 }
  0xc8   : > { %v450_v20 = vadd.s32 %v448_v15, %v442_v4  ;;  %vm451_vm4 = vc.u32 %v449_v3, %v445_v6  ;;  %v424_v21 = vsel %vm420_vm13, %v1251_v29, %v423_v62  ;;  %v474_v30 = vsel %vm473_vm3, 1, %v1085_v59 }
  0xc9   : > { %v452_v27 = vsel %vm451_vm4, 1, %v1085_v59  ;;  %v551_v35 = vadd.s32 1, %v951_v0  ;;  %v333_v37 = vsub.s32 %v329_v60, %v332_v19  ;;  %v444_v39 = vshrl.u32 %v440_v63, 16 }
  0xca   : > { %v454_v41 = vadd.s32 %v452_v27, %v450_v20  ;;  %v476_v43 = vadd.s32 %v474_v30, %v472_v33  ;;  %v466_v45 = vshrl.u32 %v462_v56, 16  ;;  %v446_v25 = vshrl.u32 %v441_v46, 16 }
  0xcb   : > { %vm552_vm5 = vcmp.gt.s32.totalorder %v551_v35, 0  ;;  %vm334_vm6 = vcmp.lt.s32.totalorder %v333_v37, 0  ;;  %v335_v48 = vsub.s32 0, %v333_v37  ;;  %v425_v32 = vsel %vm419_vm15, %v422_v17, %v424_v21 }
  0xcc   : > { %v455_v31 = vadd.s32 %v454_v41, %v444_v39  ;;  %v468_v22 = vshrl.u32 %v463_v57, 16  ;;  %v477_v29 = vadd.s32 %v476_v43, %v466_v45  ;;  %v553_v23 = vsel %vm552_vm5, %v551_v35, 0 }
  0xcd   : > { %v336_v49 = vsel %vm334_vm6, %v335_v48, %v333_v37  ;;  %v355_v50 = vsub.s32 4, %v331_v9  ;;  %v548_v54 = vand.u32 8388607, %v541_v16  ;;  %v1329_v56 = vadd.s32 %v471_v8, %v467_v7 }
  0xce   : > { %v1325_v52 = vadd.s32 %v455_v31, %v446_v25  ;;  %v337_v55 = vclz %v336_v49  ;;  %v478_v60 = vadd.s32 %v477_v29, %v468_v22  ;;  %v555_v62 = vand.u32 31, %v553_v23 }
  0xcf   : > { %vm1333_vm7 = vcmp.le.f32.partialorder %v231_v12, 0.7853982  ;;  %vm233_vm8 = vcmp.lt.s32.totalorder %v1170_v10, 0  ;;  %v325_v57 = vadd.s32 %v1272_v18, %v1280_v26  ;;  %v479_v63 = vmul.u32 %v1197_v47, %v425_v32 }
  0xd0   : > { %v946_v46 = vadd.s32 4294967294, %v337_v55  ;;  %vm481_vm9 = vc.u32 %v1325_v52, %v1329_v56  ;;  %v482_v61 = vadd.s32 1, %v478_v60  ;;  %v1343_v51 = vsub.s32 32, %v555_v62 }
  0xd1   : > { %v356_v12 = vsel %vm233_vm8, %v355_v50, %v331_v9  ;;  %v549_v28 = vor.u32 8388608, %v548_v54  ;;  %v1347_v0 = vshrl.u32 %v553_v23, 5  ;;  %v558_v1 = vshll.u32 %v1079_v36, %v555_v62 }
  0xd2   : > { %vm947_vm10 = vcmp.lt.s32.totalorder %v946_v46, 0  ;;  %v483_v2 = vsel %vm481_vm9, %v482_v61, %v478_v60  ;;  %v559_v47 = vshrl.u32 %v1080_v38, %v1343_v51  ;;  %v561_v18 = vshll.u32 %v1080_v38, %v555_v62  ;;  %v224_v60 = vpop.f32.mrf.mxu3 }
  0xd3   : > { %v340_v26 = vsel %vm947_vm10, 0, %v946_v46  ;;  %v484_v4 = vadd.s32 %v483_v2, %v479_v63  ;;  %v562_v58 = vshrl.u32 %v1081_v40, %v1343_v51  ;;  %v564_v6 = vshll.u32 %v1081_v40, %v555_v62 }
  0xd4   : > { %v341_v7 = vsub.s32 32, %v340_v26  ;;  %v345_v8 = vsub.s32 4294967266, %v340_v26  ;;  %v565_v9 = vshrl.u32 %v1082_v42, %v1343_v51  ;;  %v567_v3 = vshll.u32 %v1082_v42, %v555_v62 }
  0xd5   : > { %v342_v13 = vshll.u32 %v333_v37, %v340_v26  ;;  %v485_v15 = vadd.s32 536870912, %v484_v4  ;;  %v560_v33 = vor.u32 %v559_v47, %v558_v1  ;;  %v568_v19 = vshrl.u32 %v1083_v44, %v1343_v51 }
  0xd6   : > { %v343_v17 = vshrl.u32 %v325_v57, %v341_v7  ;;  %v346_v20 = vadd.s32 127, %v345_v8  ;;  %v1361_v21 = vor.u32 %v562_v58, %v561_v18  ;;  %v571_v27 = vshrl.u32 %v1084_v53, %v1343_v51 }
  0xd7   : > { %v358_v30 = vsel %vm1333_vm7, 0, %v356_v12  ;;  %v1367_v35 = vshrl.u32 %v485_v15, 30  ;;  %v569_v39 = vor.u32 %v568_v19, %v567_v3  ;;  %v566_v43 = vor.u32 %v565_v9, %v564_v6 }
  0xd8   : > { %v344_v41 = vor.u32 %v343_v17, %v342_v13  ;;  %v347_v37 = vshll.u32 %v346_v20, 23  ;;  %v570_v45 = vshll.u32 %v1083_v44, %v555_v62  ;;  %vm573_vm11 = vcmp.lt.s32.totalorder %v1347_v0, 1 }
  0xd9   : > { %v487_v48 = vshll.u32 %v1367_v35, 30  ;;  %v1372_v25 = vshll.u32 %v549_v28, 8  ;;  %vm576_vm12 = vcmp.lt.s32.totalorder %v1347_v0, 4  ;;  %v581_v22 = vsel %vm573_vm11, %v560_v33, %v1361_v21 }
  0xda   : > { %v348_v31 = vor.u32 4788187, %v347_v37  ;;  %v572_v32 = vor.u32 %v571_v27, %v570_v45  ;;  %v375_v29 = vadd.s32 3, %v358_v30  ;;  %vm575_vm13 = vcmp.lt.s32.totalorder %v1347_v0, 3 }
  0xdb   : > { %v1378_v23 = vsub.s32 %v484_v4, %v487_v48  ;;  %v582_v49 = vsel %vm576_vm12, %v569_v39, 920167782  ;;  %v351_v54 = vcvt.s32.f32 %v344_v41  ;;  %vm574_vm14 = vcmp.lt.s32.totalorder %v1347_v0, 2 }
  0xdc   : > { %v349_v50 = vand.u32 2147483647, %v348_v31  ;;  %v583_v55 = vsel %vm575_vm13, %v566_v43, %v582_v49  ;;  %v590_v63 = vand.u32 65535, %v1372_v25  ;;  %v585_v61 = vsel %vm573_vm11, %v1361_v21, %v566_v43 }
  0xdd   : > { %vm489_vm15 = vcmp.lt.s32.totalorder %v1378_v23, 0  ;;  %v490_v62 = vsub.s32 0, %v1378_v23  ;;  %v584_v57 = vsel %vm574_vm14, %v581_v22, %v583_v55  ;;  %v586_v12 = vsel %vm576_vm12, %v572_v32, 1326507024 }
  0xde   : > { %v352_v46 = vmul.f32 %v351_v54, %v349_v50  ;;  %v591_v28 = vshrl.u32 %v1372_v25, 16  ;;  %v1397_v1 = vand.u32 3, %v375_v29  ;;  %v587_v47 = vsel %vm575_vm13, %v569_v39, %v586_v12 }
  0xdf   : > { %v491_v2 = vsel %vm489_vm15, %v490_v62, %v1378_v23  ;;  %v1403_v18 = vadd.f32 %v1166_v5, %v224_v60  ;;  %v588_v58 = vsel %vm574_vm14, %v585_v61, %v587_v47  ;;  %v614_v6 = vand.u32 65535, %v584_v57 }
  0xe0   : > { %v353_v26 = vxor.u32 2147483648, %v352_v46  ;;  %v492_v4 = vclz %v491_v2  ;;  %v480_v7 = vadd.s32 %v1329_v56, %v1325_v52  ;;  %v557_v8 = vshrl.u32 %v1079_v36, %v1343_v51 }
  0xe1   : > { %v592_v9 = vand.u32 65535, %v588_v58  ;;  %v615_v3 = vshrl.u32 %v584_v57, 16  ;;  %v510_v5 = vsub.s32 4, %v1367_v35  ;;  %v593_v19 = vshrl.u32 %v588_v58, 16 }
  0xe2   : > { %v354_v13 = vsel %vm233_vm8, %v353_v26, %v352_v46  ;;  %v949_v15 = vadd.s32 4294967294, %v492_v4  ;;  %v1421_v52 = vsel %vm573_vm11, %v557_v8, %v560_v33  ;;  %v1425_v56 = vsel %vm576_vm12, %v566_v43, 2102212464 }
  0xe3   : > { %v1417_v17 = vsel %vm1333_vm7, %v1170_v10, %v354_v13  ;;  %v1427_v51 = vmul.u32 %v592_v9, %v591_v28  ;;  %v595_v27 = vmul.u32 %v593_v19, %v590_v63  ;;  %v616_v30 = vmul.u32 %v614_v6, %v590_v63 }
  0xe4   : > { %v359_v20 = vmul.f32 %v1417_v17, %v1417_v17  ;;  %vm950_vm0 = vcmp.lt.s32.totalorder %v949_v15, 0  ;;  %v594_v24 = vmul.u32 %v592_v9, %v590_v63  ;;  %v1431_v41 = vmul.u32 %v615_v3, %v590_v63 }
  0xe5   : > { %v495_v39 = vsel %vm950_vm0, 0, %v949_v15  ;;  %v1433_v37 = vmul.u32 %v614_v6, %v591_v28  ;;  %v597_v31 = vmul.u32 %v593_v19, %v591_v28  ;;  %v598_v32 = vshll.u32 %v595_v27, 16 }
  0xe6   : > { %v360_v33 = vmul.f32 -0.001358992, %v359_v20  ;;  %v367_v45 = vmul.f32 -0.00019511016, %v359_v20  ;;  %v496_v48 = vsub.s32 32, %v495_v39  ;;  %v500_v43 = vsub.s32 4294967266, %v495_v39 }
  0xe7   : > { %v600_v22 = vshll.u32 %v1427_v51, 16  ;;  %v619_v29 = vmul.u32 %v615_v3, %v591_v28  ;;  %v497_v54 = vshll.u32 %v1378_v23, %v495_v39  ;;  %vm602_vm1 = vc.u32 %v594_v24, %v598_v32 }
  0xe8   : > { %v361_v49 = vadd.f32 0.041655596, %v360_v33  ;;  %v368_v50 = vadd.f32 0.008332121, %v367_v45  ;;  %v498_v55 = vshrl.u32 %v480_v7, %v496_v48  ;;  %v501_v60 = vadd.s32 127, %v500_v43 }
  0xe9   : > { %v604_v62 = vadd.s32 %v598_v32, %v594_v24  ;;  %v620_v57 = vshll.u32 %v1431_v41, 16  ;;  %v603_v12 = vsel %vm602_vm1, 1, %v1085_v59  ;;  %vm388_vm2 = vcmp.lt.s32.totalorder %v1172_v11, 0 }
  0xea   : > { %v362_v63 = vmul.f32 %v361_v49, %v359_v20  ;;  %v369_v46 = vmul.f32 %v368_v50, %v359_v20  ;;  %v499_v61 = vor.u32 %v498_v55, %v497_v54  ;;  %v502_v2 = vshll.u32 %v501_v60, 23 }
  0xeb   : > { %v599_v47 = vshrl.u32 %v595_v27, 16  ;;  %v605_v28 = vadd.s32 %v603_v12, %v597_v31  ;;  %vm606_vm3 = vc.u32 %v604_v62, %v600_v22  ;;  %v622_v58 = vshll.u32 %v1433_v37, 16 }
  0xec   : > { %v363_v26 = vadd.f32 -0.4999988, %v362_v63  ;;  %v370_v4 = vadd.f32 -0.16666654, %v369_v46  ;;  %v607_v23 = vsel %vm606_vm3, 1, %v1085_v59  ;;  %vm624_vm5 = vc.u32 %v616_v30, %v620_v57 }
  0xed   : > { %vm1444_vm4 = vcmp.le.f32.partialorder %v386_v14, 0.7853982  ;;  %v503_v7 = vor.u32 4788187, %v502_v2  ;;  %v609_v8 = vadd.s32 %v607_v23, %v605_v28  ;;  %v626_v9 = vadd.s32 %v620_v57, %v616_v30 }
  0xee   : > { %v364_v3 = vmul.f32 %v363_v26, %v359_v20  ;;  %v371_v13 = vmul.f32 %v370_v4, %v359_v20  ;;  %vm377_vm6 = vcmp.lt.s32.totalorder %v1397_v1, 2  ;;  %v506_v15 = vcvt.s32.f32 %v499_v61 }
  0xef   : > { %v625_v19 = vsel %vm624_vm5, 1, %v1085_v59  ;;  %vm374_vm7 = vweird.f32 %v1170_v10  ;;  %v504_v27 = vand.u32 2147483647, %v503_v7  ;;  %v610_v39 = vadd.s32 %v609_v8, %v599_v47 }
  0xf0   : > { %v627_v14 = vadd.s32 %v625_v19, %v619_v29  ;;  %vm628_vm8 = vc.u32 %v626_v9, %v622_v58  ;;  %v365_v24 = vadd.f32 1.0, %v364_v3  ;;  %v372_v33 = vadd.f32 1.0, %v371_v13 }
  0xf1   : > { %v601_v45 = vshrl.u32 %v1427_v51, 16  ;;  %v629_v30 = vsel %vm628_vm8, 1, %v1085_v59  ;;  %v507_v20 = vmul.f32 %v506_v15, %v504_v27  ;;  %v621_v48 = vshrl.u32 %v1431_v41, 16 }
  0xf2   : > { %v631_v31 = vadd.s32 %v629_v30, %v627_v14  ;;  %v1456_v43 = vmul.f32 30.0, %v1403_v18  ;;  %v373_v32 = vmul.f32 %v372_v33, %v1417_v17  ;;  %v382_v22 = vxor.u32 2147483648, %v365_v24 }
  0xf3   : > { %v579_v29 = vsel %vm575_vm13, %v1361_v21, %v1425_v56  ;;  %v1463_v49 = vadd.s32 %v610_v39, %v601_v45  ;;  %vm378_vm9 = vcmp.eq.s32.totalorder %v1397_v1, 0  ;;  %v508_v51 = vxor.u32 2147483648, %v507_v20 }
  0xf4   : > { %v623_v41 = vshrl.u32 %v1433_v37, 16  ;;  %v632_v50 = vadd.s32 %v631_v31, %v621_v48  ;;  %v379_v18 = vxor.u32 2147483648, %v373_v32  ;;  %vm381_vm10 = vcmp.eq.s32.totalorder %v1397_v1, 2 }
  0xf5   : > { %v511_v17 = vsel %vm388_vm2, %v510_v5, %v1367_v35  ;;  %v630_v21 = vadd.s32 %v626_v9, %v622_v58  ;;  %v509_v56 = vsel %vm388_vm2, %v508_v51, %v507_v20  ;;  %v580_v54 = vsel %vm574_vm14, %v1421_v52, %v579_v29 }
  0xf6   : > { %v633_v55 = vadd.s32 %v632_v50, %v623_v41  ;;  %v699_v37 = vand.u32 2139095040, %v1456_v43  ;;  %v380_v60 = vsel %vm378_vm9, %v365_v24, %v379_v18  ;;  %v383_v62 = vsel %vm381_vm10, %v382_v22, %v373_v32 }
  0xf7   : > { %v512_v57 = vsel %vm1444_vm4, %v1172_v11, %v509_v56  ;;  %vm636_vm11 = vc.u32 %v1463_v49, %v630_v21  ;;  %v384_v35 = vsel %vm377_vm6, %v380_v60, %v383_v62  ;;  %v513_v52 = vsel %vm1444_vm4, 0, %v511_v17 }
  0xf8   : > { %v514_v5 = vmul.f32 %v512_v57, %v512_v57  ;;  %v637_v63 = vadd.s32 1, %v633_v55  ;;  %v700_v46 = vshrl.u32 %v699_v37, 23  ;;  %v385_v0 = vsel %vm374_vm7, nan, %v384_v35 }
  0xf9   : > { %v634_v61 = vmul.u32 %v1372_v25, %v580_v54  ;;  %851 = vst [vmem:[%s1492_s8] sm:$0xff] %v385_v0  ;;  %v530_v23 = vadd.s32 3, %v513_v52  ;;  %v696_v25 = vand.u32 2147483647, %v1456_v43  ;;  %vm529_vm13 = vweird.f32 %v1172_v11 }
  0xfa   : > { %v515_v12 = vmul.f32 -0.001358992, %v514_v5  ;;  %v522_v2 = vmul.f32 -0.00019511016, %v514_v5  ;;  %v638_v47 = vsel %vm636_vm11, %v637_v63, %v633_v55  ;;  %v954_v1 = vadd.s32 4294967169, %v700_v46 }
  0xfb   : > { %v639_v28 = vadd.s32 %v638_v47, %v634_v61  ;;  %v531_v15 = vand.u32 3, %v530_v23  ;;  %v703_v45 = vand.u32 8388607, %v696_v25  ;;  %v635_v29 = vadd.s32 %v630_v21, %v1463_v49 }
  0xfc   : > { %v516_v26 = vadd.f32 0.041655596, %v515_v12  ;;  %v523_v4 = vadd.f32 0.008332121, %v522_v2  ;;  %v706_v58 = vadd.s32 1, %v954_v1  ;;  %vm543_vm7 = vcmp.lt.s32.totalorder %v1189_v34, 0 }
  0xfd   : > { %v640_v10 = vadd.s32 536870912, %v639_v28  ;;  %vm532_vm14 = vcmp.lt.s32.totalorder %v531_v15, 2  ;;  %vm533_vm15 = vcmp.eq.s32.totalorder %v531_v15, 0  ;;  %vm536_vm1 = vcmp.eq.s32.totalorder %v531_v15, 2 }
  0xfe   : > { %v517_v7 = vmul.f32 %v516_v26, %v514_v5  ;;  %v524_v8 = vmul.f32 %v523_v4, %v514_v5  ;;  %vm707_vm12 = vcmp.gt.s32.totalorder %v706_v58, 0  ;;  %v704_v41 = vor.u32 8388608, %v703_v45 }
  0xff   : > { %v1495_v6 = vshrl.u32 %v640_v10, 30  ;;  %v708_v9 = vsel %vm707_vm12, %v706_v58, 0  ;;  %vm1559_vm8 = vcmp.le.f32.partialorder %v541_v16, 0.7853982 }
 0x100   : > { %v518_v3 = vadd.f32 -0.4999988, %v517_v7  ;;  %v525_v13 = vadd.f32 -0.16666654, %v524_v8  ;;  %v710_v19 = vand.u32 31, %v708_v9  ;;  %v1510_v54 = vshrl.u32 %v708_v9, 5 }
 0x101   : > { %v642_v27 = vshll.u32 %v1495_v6, 30  ;;  %v1531_v2 = vshll.u32 %v704_v41, 8 }
 0x102   : > { %v519_v39 = vmul.f32 %v518_v3, %v514_v5  ;;  %v526_v14 = vmul.f32 %v525_v13, %v514_v5  ;;  %v1499_v24 = vsub.s32 32, %v710_v19  ;;  %v713_v50 = vshll.u32 %v1079_v36, %v710_v19 }
 0x103   : > { %v643_v33 = vsub.s32 %v639_v28, %v642_v27  ;;  %v716_v60 = vshll.u32 %v1080_v38, %v710_v19  ;;  %v719_v49 = vshll.u32 %v1081_v40, %v710_v19  ;;  %v722_v21 = vshll.u32 %v1082_v42, %v710_v19 }
 0x104   : > { %v520_v30 = vadd.f32 1.0, %v519_v39  ;;  %v527_v20 = vadd.f32 1.0, %v526_v14  ;;  %v714_v31 = vshrl.u32 %v1080_v38, %v1499_v24  ;;  %v717_v18 = vshrl.u32 %v1081_v40, %v1499_v24 }
 0x105   : > { %vm644_vm0 = vcmp.lt.s32.totalorder %v643_v33, 0  ;;  %v645_v48 = vsub.s32 0, %v643_v33  ;;  %v720_v55 = vshrl.u32 %v1082_v42, %v1499_v24  ;;  %v723_v5 = vshrl.u32 %v1083_v44, %v1499_v24 }
 0x106   : > { %v528_v32 = vmul.f32 %v527_v20, %v512_v57  ;;  %v537_v22 = vxor.u32 2147483648, %v520_v30  ;;  %v715_v37 = vor.u32 %v714_v31, %v713_v50  ;;  %v1522_v46 = vor.u32 %v717_v18, %v716_v60 }
 0x107   : > { %v646_v51 = vsel %vm644_vm0, %v645_v48, %v643_v33  ;;  %v725_v0 = vshll.u32 %v1083_v44, %v710_v19  ;;  %v726_v38 = vshrl.u32 %v1084_v53, %v1499_v24  ;;  %v721_v42 = vor.u32 %v720_v55, %v719_v49 }
 0x108   : > { %v534_v17 = vxor.u32 2147483648, %v528_v32  ;;  %v647_v56 = vclz %v646_v51  ;;  %v538_v57 = vsel %vm536_vm1, %v537_v22, %v528_v32  ;;  %v724_v52 = vor.u32 %v723_v5, %v722_v21 }
 0x109   : > { %v727_v12 = vor.u32 %v726_v38, %v725_v0  ;;  %vm728_vm3 = vcmp.lt.s32.totalorder %v1510_v54, 1  ;;  %vm729_vm4 = vcmp.lt.s32.totalorder %v1510_v54, 2  ;;  %vm731_vm5 = vcmp.lt.s32.totalorder %v1510_v54, 4 }
 0x10a   : > { %v535_v62 = vsel %vm533_vm15, %v520_v30, %v534_v17  ;;  %v952_v35 = vadd.s32 4294967294, %v647_v56  ;;  %vm730_vm6 = vcmp.lt.s32.totalorder %v1510_v54, 3  ;;  %v736_v11 = vsel %vm728_vm3, %v715_v37, %v1522_v46 }
 0x10b   : > { %v539_v63 = vsel %vm532_vm14, %v535_v62, %v538_v57  ;;  %v737_v53 = vsel %vm731_vm5, %v724_v52, 920167782  ;;  %v740_v23 = vsel %vm728_vm3, %v1522_v46, %v721_v42  ;;  %v741_v10 = vsel %vm731_vm5, %v727_v12, 1326507024 }
 0x10c   : > { %v540_v40 = vsel %vm529_vm13, nan, %v539_v63  ;;  %vm953_vm2 = vcmp.lt.s32.totalorder %v952_v35, 0  ;;  %v738_v4 = vsel %vm730_vm6, %v721_v42, %v737_v53  ;;  %v742_v9 = vsel %vm730_vm6, %v724_v52, %v741_v10 }
 0x10d   : > { %852 = vst [vmem:[%s1492_s8 + $0x8] sm:$0xff] %v540_v40  ;;  %v650_v61 = vsel %vm953_vm2, 0, %v952_v35  ;;  %v739_v58 = vsel %vm729_vm4, %v736_v11, %v738_v4  ;;  %v743_v13 = vsel %vm729_vm4, %v740_v23, %v742_v9  ;;  %v745_v15 = vand.u32 65535, %v1531_v2 }
 0x10e   : > { %v651_v47 = vsub.s32 32, %v650_v61  ;;  %v655_v1 = vsub.s32 4294967266, %v650_v61  ;;  %v652_v44 = vshll.u32 %v643_v33, %v650_v61  ;;  %v769_v3 = vand.u32 65535, %v739_v58 }
 0x10f   : > { %v746_v19 = vshrl.u32 %v1531_v2, 16  ;;  %v770_v27 = vshrl.u32 %v739_v58, 16  ;;  %v747_v33 = vand.u32 65535, %v743_v13  ;;  %v748_v45 = vshrl.u32 %v743_v13, 16 }
 0x110   : > { %v653_v28 = vshrl.u32 %v635_v29, %v651_v47  ;;  %v656_v26 = vadd.s32 127, %v655_v1  ;;  %v665_v30 = vsub.s32 4, %v1495_v6  ;;  %v712_v20 = vshrl.u32 %v1079_v36, %v1499_v24 }
 0x111   : > { %v772_v48 = vmul.u32 %v770_v27, %v745_v15  ;;  %v773_v31 = vmul.u32 %v769_v3, %v746_v19  ;;  %v750_v29 = vmul.u32 %v748_v45, %v745_v15  ;;  %v751_v51 = vmul.u32 %v747_v33, %v746_v19 }
 0x112   : > { %v654_v7 = vor.u32 %v653_v28, %v652_v44  ;;  %v657_v8 = vshll.u32 %v656_v26, 23  ;;  %v732_v16 = vsel %vm728_vm3, %v712_v20, %v715_v37  ;;  %v771_v41 = vmul.u32 %v769_v3, %v745_v15 }
 0x113   : > { %v774_v50 = vmul.u32 %v770_v27, %v746_v19  ;;  %v775_v18 = vshll.u32 %v772_v48, 16  ;;  %v749_v56 = vmul.u32 %v747_v33, %v745_v15  ;;  %v752_v55 = vmul.u32 %v748_v45, %v746_v19 }
 0x114   : > { %v658_v14 = vor.u32 4788187, %v657_v8  ;;  %v661_v22 = vcvt.s32.f32 %v654_v7  ;;  %v753_v60 = vshll.u32 %v750_v29, 16  ;;  %v755_v49 = vshll.u32 %v751_v51, 16 }
 0x115   : > { %v777_v21 = vshll.u32 %v773_v31, 16  ;;  %vm779_vm9 = vc.u32 %v771_v41, %v775_v18  ;;  %v781_v36 = vadd.s32 %v775_v18, %v771_v41  ;;  %v733_v35 = vsel %vm731_vm5, %v721_v42, 2102212464 }
 0x116   : > { %v659_v32 = vand.u32 2147483647, %v658_v14  ;;  %vm757_vm10 = vc.u32 %v749_v56, %v753_v60  ;;  %v759_v62 = vadd.s32 %v753_v60, %v749_v56  ;;  %v780_v57 = vsel %vm779_vm9, 1, %v1085_v59 }
 0x117   : > { %v758_v37 = vsel %vm757_vm10, 1, %v1085_v59  ;;  %v782_v5 = vadd.s32 %v780_v57, %v774_v50  ;;  %vm783_vm11 = vc.u32 %v781_v36, %v777_v21  ;;  %v776_v61 = vshrl.u32 %v772_v48, 16 }
 0x118   : > { %v662_v17 = vmul.f32 %v661_v22, %v659_v32  ;;  %v760_v0 = vadd.s32 %v758_v37, %v752_v55  ;;  %vm761_vm12 = vc.u32 %v759_v62, %v755_v49  ;;  %v784_v38 = vsel %vm783_vm11, 1, %v1085_v59 }
 0x119   : > { %v762_v52 = vsel %vm761_vm12, 1, %v1085_v59  ;;  %v786_v12 = vadd.s32 %v784_v38, %v782_v5  ;;  %v734_v47 = vsel %vm730_vm6, %v1522_v46, %v733_v35  ;;  %v754_v1 = vshrl.u32 %v750_v29, 16 }
 0x11a   : > { %v663_v24 = vxor.u32 2147483648, %v662_v17  ;;  %v764_v44 = vadd.s32 %v762_v52, %v760_v0  ;;  %v666_v11 = vsel %vm543_vm7, %v665_v30, %v1495_v6  ;;  %v778_v53 = vshrl.u32 %v773_v31, 16 }
 0x11b   : > { %v787_v28 = vadd.s32 %v786_v12, %v776_v61  ;;  %v756_v23 = vshrl.u32 %v751_v51, 16  ;;  %v735_v59 = vsel %vm729_vm4, %v732_v16, %v734_v47  ;;  %v785_v46 = vadd.s32 %v781_v36, %v777_v21 }
 0x11c   : > { %v664_v63 = vsel %vm543_vm7, %v663_v24, %v662_v17  ;;  %v765_v58 = vadd.s32 %v764_v44, %v754_v1  ;;  %v668_v3 = vsel %vm1559_vm8, 0, %v666_v11  ;;  %v789_v19 = vmul.u32 %v1531_v2, %v735_v59 }
 0x11d   : > { %v667_v40 = vsel %vm1559_vm8, %v1189_v34, %v664_v63  ;;  %v788_v10 = vadd.s32 %v787_v28, %v778_v53  ;;  %v685_v54 = vadd.s32 3, %v668_v3  ;;  %vm684_vm2 = vweird.f32 %v1189_v34 }
 0x11e   : > { %v669_v42 = vmul.f32 %v667_v40, %v667_v40  ;;  %v766_v9 = vadd.s32 %v765_v58, %v756_v23  ;;  %vm698_vm4 = vcmp.lt.s32.totalorder %v1456_v43, 0  ;;  %vm697_vm5 = vcmp.le.f32.partialorder %v696_v25, 0.7853982 }
 0x11f   : > { %v792_v13 = vadd.s32 1, %v788_v10  ;;  %v686_v29 = vand.u32 3, %v685_v54  ;;  %vm839_vm9 = vweird.f32 %v1456_v43 }
 0x120   : > { %v670_v26 = vmul.f32 -0.001358992, %v669_v42  ;;  %v677_v4 = vmul.f32 -0.00019511016, %v669_v42  ;;  %vm791_vm13 = vc.u32 %v766_v9, %v785_v46  ;;  %v790_v24 = vadd.s32 %v785_v46, %v766_v9 }
 0x121   : > { %v793_v27 = vsel %vm791_vm13, %v792_v13, %v788_v10  ;;  %vm687_vm14 = vcmp.lt.s32.totalorder %v686_v29, 2  ;;  %vm688_vm15 = vcmp.eq.s32.totalorder %v686_v29, 0  ;;  %vm691_vm0 = vcmp.eq.s32.totalorder %v686_v29, 2 }
 0x122   : > { %v671_v7 = vadd.f32 0.041655596, %v670_v26  ;;  %v678_v8 = vadd.f32 0.008332121, %v677_v4  ;;  %v794_v45 = vadd.s32 %v793_v27, %v789_v19 }
 0x124   : > { %v672_v15 = vmul.f32 %v671_v7, %v669_v42  ;;  %v679_v6 = vmul.f32 %v678_v8, %v669_v42  ;;  %v795_v48 = vadd.s32 536870912, %v794_v45 }
 0x126   : > { %v673_v14 = vadd.f32 -0.4999988, %v672_v15  ;;  %v680_v33 = vadd.f32 -0.16666654, %v679_v6  ;;  %v796_v22 = vshrl.u32 %v795_v48, 30 }
 0x128   : > { %v674_v30 = vmul.f32 %v673_v14, %v669_v42  ;;  %v681_v20 = vmul.f32 %v680_v33, %v669_v42  ;;  %v797_v16 = vshll.u32 %v796_v22, 30  ;;  %v820_v42 = vsub.s32 4, %v796_v22 }
 0x12a   : > { %v675_v31 = vadd.f32 1.0, %v674_v30  ;;  %v682_v32 = vadd.f32 1.0, %v681_v20  ;;  %v798_v50 = vsub.s32 %v794_v45, %v797_v16  ;;  %v821_v53 = vsel %vm698_vm4, %v820_v42, %v796_v22 }
 0x12b   : > { %v823_v4 = vsel %vm697_vm5, 0, %v821_v53 }
 0x12c   : > { %v683_v39 = vmul.f32 %v682_v32, %v667_v40  ;;  %v692_v51 = vxor.u32 2147483648, %v675_v31  ;;  %vm799_vm1 = vcmp.lt.s32.totalorder %v798_v50, 0  ;;  %v800_v17 = vsub.s32 0, %v798_v50 }
 0x12d   : > { %v840_v7 = vadd.s32 3, %v823_v4 }
 0x12e   : > { %v689_v41 = vxor.u32 2147483648, %v683_v39  ;;  %v693_v18 = vsel %vm691_vm0, %v692_v51, %v683_v39  ;;  %v801_v60 = vsel %vm799_vm1, %v800_v17, %v798_v50 }
 0x12f   : > { %v802_v49 = vclz %v801_v60  ;;  %v841_v3 = vand.u32 3, %v840_v7 }
 0x130   : > { %v690_v2 = vsel %vm688_vm15, %v675_v31, %v689_v41 }
 0x131   : > { %v694_v56 = vsel %vm687_vm14, %v690_v2, %v693_v18  ;;  %v955_v21 = vadd.s32 4294967294, %v802_v49  ;;  %vm843_vm6 = vcmp.eq.s32.totalorder %v841_v3, 0  ;;  %vm846_vm7 = vcmp.eq.s32.totalorder %v841_v3, 2 }
 0x132   : > { %v695_v55 = vsel %vm684_vm2, nan, %v694_v56  ;;  %vm842_vm8 = vcmp.lt.s32.totalorder %v841_v3, 2 }
 0x133   : > { %853 = vst [vmem:[%s1492_s8 + $0x10] sm:$0xff] %v695_v55  ;;  %vm956_vm3 = vcmp.lt.s32.totalorder %v955_v21, 0 }
 0x134   : > { %v805_v36 = vsel %vm956_vm3, 0, %v955_v21 }
 0x135   : > { %v806_v62 = vsub.s32 32, %v805_v36  ;;  %v810_v57 = vsub.s32 4294967266, %v805_v36  ;;  %v807_v35 = vshll.u32 %v798_v50, %v805_v36 }
 0x137   : > { %v808_v37 = vshrl.u32 %v790_v24, %v806_v62  ;;  %v811_v5 = vadd.s32 127, %v810_v57 }
 0x139   : > { %v809_v63 = vor.u32 %v808_v37, %v807_v35  ;;  %v812_v0 = vshll.u32 %v811_v5, 23 }
 0x13b   : > { %v813_v38 = vor.u32 4788187, %v812_v0  ;;  %v816_v52 = vcvt.s32.f32 %v809_v63 }
 0x13d   : > { %v814_v40 = vand.u32 2147483647, %v813_v38 }
 0x13f   : > { %v817_v34 = vmul.f32 %v816_v52, %v814_v40 }
 0x141   : > { %v818_v61 = vxor.u32 2147483648, %v817_v34 }
 0x143   : > { %v819_v12 = vsel %vm698_vm4, %v818_v61, %v817_v34 }
 0x144   : > { %v822_v47 = vsel %vm697_vm5, %v1456_v43, %v819_v12 }
 0x145   : > { %v824_v1 = vmul.f32 %v822_v47, %v822_v47 }
 0x147   : > { %v825_v44 = vmul.f32 -0.001358992, %v824_v1  ;;  %v832_v11 = vmul.f32 -0.00019511016, %v824_v1 }
 0x149   : > { %v826_v28 = vadd.f32 0.041655596, %v825_v44  ;;  %v833_v26 = vadd.f32 0.008332121, %v832_v11 }
 0x14b   : > { %v827_v23 = vmul.f32 %v826_v28, %v824_v1  ;;  %v834_v58 = vmul.f32 %v833_v26, %v824_v1 }
 0x14d   : > { %v828_v59 = vadd.f32 -0.4999988, %v827_v23  ;;  %v835_v10 = vadd.f32 -0.16666654, %v834_v58 }
 0x14f   : > { %v829_v25 = vmul.f32 %v828_v59, %v824_v1  ;;  %v836_v8 = vmul.f32 %v835_v10, %v824_v1 }
 0x151   : > { %v830_v9 = vadd.f32 1.0, %v829_v25  ;;  %v837_v46 = vadd.f32 1.0, %v836_v8 }
 0x153   : > { %v838_v13 = vmul.f32 %v837_v46, %v822_v47  ;;  %v847_v15 = vxor.u32 2147483648, %v830_v9 }
 0x155   : > { %v844_v6 = vxor.u32 2147483648, %v838_v13  ;;  %v848_v27 = vsel %vm846_vm7, %v847_v15, %v838_v13 }
 0x157   : > { %v845_v19 = vsel %vm843_vm6, %v830_v9, %v844_v6 }
 0x158   : > { %v849_v14 = vsel %vm842_vm8, %v845_v19, %v848_v27 }
 0x159   : > { %v850_v33 = vsel %vm839_vm9, nan, %v849_v14 }
 0x15a   : > { %854 = vst [vmem:[%s1492_s8 + $0x18] sm:$0xff] %v850_v33 }
 0x15b   : > { %1042 = shalt.err (!%p1039_p3)
}
 0x15c   : > { %s1086_s4 = smov 128   ;;  %s1087_s5 = smov 8  }
 0x15d   : > { %966 = dma.vmem_to_hbm [thread:$0]  (%p1146_p5), %s869_s19, 512, %s871_s20, %s856_s16, %s1086_s4, %s1086_s4, %s1087_s5  }
 0x15e PF: > { %p972_p4 = scmp.ge.s32.totalorder %s1077_s15, 2  ;;  %s885_s6 = sand.u32 1, %s1065_s12  }
 0x15f   : > { %s886_s7 = scalar_lea.sflag [#allocation3], %s885_s6 }
 0x160   : > { %p969_p7 = pnand %p972_p4, %p1150_p6 }
 0x162   : > { %p970_p8 = pneg %p969_p7 }
 0x164   : > { %1060 = dma.done.wait (%p970_p8), %s886_s7, 512  }
 0x165   : > { %1062 = vsyncadd (%p970_p8), %s886_s7, 4294966784  ;;  %p13_p9 = scmp.ge.s32.totalorder %s1133_s18, 4   ;;  %s1644_s12 = smov %s1069_s13 }
 0x166   : > { %s1645_s13 = smov %s1073_s14  ;;  %s1646_s14 = smov %s1144_s21 }
 0x167   : > { %s1647_s15 = smov %s1133_s18  ;;  %15 = sbr.rel (!%p13_p9) target bundleno = 3 (0x3), region = 67 }
 0x16c   :  { %892 = vsyncpa [#allocation3], 1 }
 0x16d   :  { %894 = vsyncpa [#allocation3 + $0x1], 1 }

</bundles_post_ra>
